<compile_context>
chip_gen: v6e
topology: v6e:2x2x1
jax: 0.10.0
libtpu: 0.0.40
codegen_flags: <defaults>
</compile_context>

<pallas_src>
import functools

import jax
import jax.numpy as jnp
from jax.experimental import pallas as pl
from jax.experimental.pallas import tpu as pltpu


def _recur_kernel(x_ref, wxh_ref, whh_ref, bh_ref, who_ref, bo_ref,
                  out_ref, mem_ref, *, t_chunk, b_chunk, n_interleave):
    # Reset recurrent memory at the start of each batch-chunk's time sweep.
    @pl.when(pl.program_id(1) == 0)
    def _():
        mem_ref[...] = jnp.zeros_like(mem_ref)

    # Hoist weight / bias loads out of all loops.
    wxh = wxh_ref[...]                         # (C, H)
    whh = whh_ref[...]                         # (H, H)
    who = who_ref[...]                         # (H, O)
    b_h = bh_ref[...]                          # (1, H)
    b_o = bo_ref[...]                          # (1, O)
    C = wxh.shape[0]
    H = whh.shape[0]
    O = who.shape[1]

    # ---- Phase 1 (off the serial path): one tall input-projection matmul for
    # the whole chunk; x is already (t_chunk, b_chunk, C) so no transposes.
    x_all = x_ref[...].reshape(t_chunk * b_chunk, C)
    proj = jnp.dot(x_all, wxh, preferred_element_type=jnp.float32) + b_h
    proj = proj.reshape(t_chunk, b_chunk, H)   # leading-axis time slices are cheap

    # ---- Phase 2 (serial critical path): recurrence over the time chunk.
    # State kept in registers; k independent batch sub-chains interleaved per
    # step to hide MXU + EUP latency.
    k = n_interleave
    b_sub = b_chunk // k
    mems = [mem_ref[pl.ds(j * b_sub, b_sub), :] for j in range(k)]
    hs = [[] for _ in range(k)]                # hs[j][t] : (b_sub, H)
    for t in range(t_chunk):                   # static unroll (t_chunk is static)
        p_t = proj[t]                          # (b_chunk, H)
        new_mems = []
        for j in range(k):
            p_sub = p_t[j * b_sub:(j + 1) * b_sub, :]
            m = jnp.tanh(p_sub + jnp.dot(mems[j], whh,
                                         preferred_element_type=jnp.float32))
            new_mems.append(m)
            hs[j].append(m)
        mems = new_mems
    for j in range(k):                         # carry memory to next time chunk
        mem_ref[pl.ds(j * b_sub, b_sub), :] = mems[j]

    # ---- Phase 3 (off the serial path): one big output projection per chain,
    # stored directly in (t_chunk, b_chunk, O) layout — no transposes.
    for j in range(k):
        h_all = jnp.stack(hs[j], axis=0).reshape(t_chunk * b_sub, H)
        o_all = jnp.dot(h_all, who, preferred_element_type=jnp.float32) + b_o
        out_ref[:, pl.ds(j * b_sub, b_sub), :] = (
            o_all.reshape(t_chunk, b_sub, O).astype(out_ref.dtype))


def _largest_divisor_leq(n, cap):
    d = min(n, cap)
    while n % d:
        d -= 1
    return d


def recur(x, w_xh, w_hh, b_h, w_ho, b_o, *,
          t_chunk=None, b_chunk=None, interleave=None):
    """x: (B, C, T) float32.  Returns (B, O, T) float32 (intermediate outputs)."""
    B, C, T = x.shape
    H = w_hh.shape[0]
    O = w_ho.shape[1]

    b_chunk = _largest_divisor_leq(B, 128) if b_chunk is None else b_chunk
    t_chunk = _largest_divisor_leq(T, 32) if t_chunk is None else t_chunk
    assert B % b_chunk == 0 and T % t_chunk == 0
    if interleave is None:
        interleave = 2 if (b_chunk % 16 == 0) else 1
    assert b_chunk % interleave == 0

    # Wrapper-side layout plumbing (cheap XLA copies, not kernel compute):
    # present x time-major so every kernel access is a leading-axis slice.
    x_tbc = jnp.transpose(x, (2, 0, 1)).astype(jnp.float32)   # (T, B, C)
    b_h2 = b_h.reshape(1, H).astype(jnp.float32)
    b_o2 = b_o.reshape(1, O).astype(jnp.float32)

    kernel = functools.partial(_recur_kernel, t_chunk=t_chunk, b_chunk=b_chunk,
                               n_interleave=interleave)

    out_tbo = pl.pallas_call(
        kernel,
        out_shape=jax.ShapeDtypeStruct((T, B, O), jnp.float32),
        grid_spec=pltpu.PrefetchScalarGridSpec(
            num_scalar_prefetch=0,
            grid=(B // b_chunk, T // t_chunk),
            in_specs=[
                pl.BlockSpec((t_chunk, b_chunk, C), lambda bi, ti: (ti, bi, 0)),
                pl.BlockSpec((C, H), lambda bi, ti: (0, 0)),     # W_xh
                pl.BlockSpec((H, H), lambda bi, ti: (0, 0)),     # W_hh
                pl.BlockSpec((1, H), lambda bi, ti: (0, 0)),     # b_h
                pl.BlockSpec((H, O), lambda bi, ti: (0, 0)),     # W_ho
                pl.BlockSpec((1, O), lambda bi, ti: (0, 0)),     # b_o
            ],
            out_specs=pl.BlockSpec((t_chunk, b_chunk, O),
                                   lambda bi, ti: (ti, bi, 0)),
            scratch_shapes=[
                pltpu.VMEM((b_chunk, H), jnp.float32),           # recurrent memory
            ],
        ),
        compiler_params=pltpu.CompilerParams(
            # batch-chunk axis parallel (megacore), time-chunk axis sequential
            dimension_semantics=("parallel", "arbitrary"),
            vmem_limit_bytes=32 * 1024 * 1024,
        ),
    )(x_tbc, w_xh, w_hh, b_h2, w_ho, b_o2)

    # Final permutation to match torch.stack(outs, dim=-1): (B, O, T).
    return jnp.transpose(out_tbo, (1, 2, 0))


def recur_ref(x, w_xh, w_hh, b_h, w_ho, b_o):
    """Pure-JAX reference mirroring the PyTorch loop exactly."""
    B, C, T = x.shape
    H = w_hh.shape[0]
    memory = jnp.zeros((B, H), jnp.float32)
    outs = []
    for t in range(T):
        inp = x[:, :, t]
        memory = jnp.tanh(inp @ w_xh + memory @ w_hh + b_h)
        outs.append(memory @ w_ho + b_o)
    return jnp.stack(outs, axis=-1)


if __name__ == "__main__":
    B, C, T = 8, 16, 8      # batch, channels, path length
    H, O = 32, 32           # memory_shape=(H,), module output dim

    key = jax.random.PRNGKey(0)
    kx, k1, k2, k3, k4, k5 = jax.random.split(key, 6)
    x = jax.random.normal(kx, (B, C, T), jnp.float32)
    w_xh = jax.random.normal(k1, (C, H), jnp.float32) * 0.1
    w_hh = jax.random.normal(k2, (H, H), jnp.float32) * 0.1
    b_h = jax.random.normal(k3, (H,), jnp.float32) * 0.1
    w_ho = jax.random.normal(k4, (H, O), jnp.float32) * 0.1
    b_o = jax.random.normal(k5, (O,), jnp.float32) * 0.1

    out = recur(x, w_xh, w_hh, b_h, w_ho, b_o)
    jax.block_until_ready(out)

    ref = recur_ref(x, w_xh, w_hh, b_h, w_ho, b_o)
    assert out.shape == (B, O, T), out.shape
    assert jnp.allclose(out, ref, atol=1e-5, rtol=1e-5), \
        float(jnp.max(jnp.abs(out - ref)))

    print("KERNEL_OK")
</pallas_src>

<mosaic_0001>
module attributes {stable_mosaic.version = 11 : i64} {
  func.func @_recur_kernel(%arg0: i32, %arg1: i32, %arg2: memref<8x8x16xf32, #tpu.memory_space<vmem>>, %arg3: memref<16x32xf32, #tpu.memory_space<vmem>>, %arg4: memref<32x32xf32, #tpu.memory_space<vmem>>, %arg5: memref<1x32xf32, #tpu.memory_space<vmem>>, %arg6: memref<32x32xf32, #tpu.memory_space<vmem>>, %arg7: memref<1x32xf32, #tpu.memory_space<vmem>>, %arg8: memref<8x8x32xf32, #tpu.memory_space<vmem>>, %arg9: memref<8x32xf32, #tpu.memory_space<vmem>>) attributes {dimension_semantics = [#tpu.dimension_semantics<parallel>, #tpu.dimension_semantics<arbitrary>], iteration_bounds = array<i64: 1, 1>, scalar_prefetch = 0 : i64, scratch_operands = 1 : i64, tpu.core_type = #tpu.core_type<tc>, window_params = [{transform_indices = @transform_0, window_bounds = array<i64: 8, 8, 16>}, {pipeline_mode = #tpu.pipeline_mode<synchronous>, transform_indices = @transform_1, window_bounds = array<i64: 16, 32>}, {pipeline_mode = #tpu.pipeline_mode<synchronous>, transform_indices = @transform_2, window_bounds = array<i64: 32, 32>}, {pipeline_mode = #tpu.pipeline_mode<synchronous>, transform_indices = @transform_3, window_bounds = array<i64: 1, 32>}, {pipeline_mode = #tpu.pipeline_mode<synchronous>, transform_indices = @transform_4, window_bounds = array<i64: 32, 32>}, {pipeline_mode = #tpu.pipeline_mode<synchronous>, transform_indices = @transform_5, window_bounds = array<i64: 1, 32>}, {transform_indices = @transform_6, window_bounds = array<i64: 8, 8, 32>}]} {
    %c0_i32 = arith.constant 0 : i32
    %0 = arith.cmpi eq, %arg1, %c0_i32 : i32
    %1 = arith.extui %0 : i1 to i32
    %c0_i32_0 = arith.constant 0 : i32
    %2 = arith.cmpi ne, %1, %c0_i32_0 : i32
    scf.if %2 {
      %cst_29 = arith.constant 0.000000e+00 : f32
      %71 = vector.broadcast %cst_29 : f32 to vector<8x32xf32>
      %c0_30 = arith.constant 0 : index
      %c0_31 = arith.constant 0 : index
      %72 = vector.load %arg9[%c0_30, %c0_31] : memref<8x32xf32, #tpu.memory_space<vmem>>, vector<8x32xf32>
      tpu.vector_store %arg9[%c0_30, %c0_31], %71 {strides = array<i32>} : memref<8x32xf32, #tpu.memory_space<vmem>>, vector<8x32xf32>,
    } else {
    }
    %c0 = arith.constant 0 : index
    %c0_1 = arith.constant 0 : index
    %3 = vector.load %arg3[%c0, %c0_1] : memref<16x32xf32, #tpu.memory_space<vmem>>, vector<16x32xf32>
    %c0_2 = arith.constant 0 : index
    %c0_3 = arith.constant 0 : index
    %4 = vector.load %arg4[%c0_2, %c0_3] : memref<32x32xf32, #tpu.memory_space<vmem>>, vector<32x32xf32>
    %c0_4 = arith.constant 0 : index
    %c0_5 = arith.constant 0 : index
    %5 = vector.load %arg6[%c0_4, %c0_5] : memref<32x32xf32, #tpu.memory_space<vmem>>, vector<32x32xf32>
    %c0_6 = arith.constant 0 : index
    %c0_7 = arith.constant 0 : index
    %6 = vector.load %arg5[%c0_6, %c0_7] : memref<1x32xf32, #tpu.memory_space<vmem>>, vector<1x32xf32>
    %c0_8 = arith.constant 0 : index
    %c0_9 = arith.constant 0 : index
    %7 = vector.load %arg7[%c0_8, %c0_9] : memref<1x32xf32, #tpu.memory_space<vmem>>, vector<1x32xf32>
    %c0_10 = arith.constant 0 : index
    %c0_11 = arith.constant 0 : index
    %c0_12 = arith.constant 0 : index
    %8 = vector.load %arg2[%c0_10, %c0_11, %c0_12] : memref<8x8x16xf32, #tpu.memory_space<vmem>>, vector<8x8x16xf32>
    %9 = vector.shape_cast %8 : vector<8x8x16xf32> to vector<64x16xf32>
    %cst = arith.constant dense<0.000000e+00> : vector<64x32xf32>
    %10 = tpu.matmul %9, %3, %cst {dimension_numbers = #tpu.dot_dimension_numbers<[1], [0], [0], [1], [0, 0, 1, 1], [], []>} : vector<64x16xf32>, vector<16x32xf32>, vector<64x32xf32> -> vector<64x32xf32>
    %11 = vector.broadcast %6 : vector<1x32xf32> to vector<64x32xf32>
    %12 = arith.addf %10, %11 : vector<64x32xf32>
    %13 = vector.shape_cast %12 : vector<64x32xf32> to vector<8x8x32xf32>
    %c0_13 = arith.constant 0 : index
    %c0_14 = arith.constant 0 : index
    %14 = vector.load %arg9[%c0_13, %c0_14] : memref<8x32xf32, #tpu.memory_space<vmem>>, vector<8x32xf32>
    %15 = vector.extract_strided_slice %13 {offsets = [0, 0, 0], sizes = [1, 8, 32], strides = [1, 1, 1]} : vector<8x8x32xf32> to vector<1x8x32xf32>
    %16 = vector.shape_cast %15 : vector<1x8x32xf32> to vector<8x32xf32>
    %cst_15 = arith.constant dense<0.000000e+00> : vector<8x32xf32>
    %17 = tpu.matmul %14, %4, %cst_15 {dimension_numbers = #tpu.dot_dimension_numbers<[1], [0], [0], [1], [0, 0, 1, 1], [], []>} : vector<8x32xf32>, vector<32x32xf32>, vector<8x32xf32> -> vector<8x32xf32>
    %18 = arith.addf %16, %17 : vector<8x32xf32>
    %19 = math.tanh %18 : vector<8x32xf32>
    %20 = vector.extract_strided_slice %13 {offsets = [1, 0, 0], sizes = [1, 8, 32], strides = [1, 1, 1]} : vector<8x8x32xf32> to vector<1x8x32xf32>
    %21 = vector.shape_cast %20 : vector<1x8x32xf32> to vector<8x32xf32>
    %cst_16 = arith.constant dense<0.000000e+00> : vector<8x32xf32>
    %22 = tpu.matmul %19, %4, %cst_16 {dimension_numbers = #tpu.dot_dimension_numbers<[1], [0], [0], [1], [0, 0, 1, 1], [], []>} : vector<8x32xf32>, vector<32x32xf32>, vector<8x32xf32> -> vector<8x32xf32>
    %23 = arith.addf %21, %22 : vector<8x32xf32>
    %24 = math.tanh %23 : vector<8x32xf32>
    %25 = vector.extract_strided_slice %13 {offsets = [2, 0, 0], sizes = [1, 8, 32], strides = [1, 1, 1]} : vector<8x8x32xf32> to vector<1x8x32xf32>
    %26 = vector.shape_cast %25 : vector<1x8x32xf32> to vector<8x32xf32>
    %cst_17 = arith.constant dense<0.000000e+00> : vector<8x32xf32>
    %27 = tpu.matmul %24, %4, %cst_17 {dimension_numbers = #tpu.dot_dimension_numbers<[1], [0], [0], [1], [0, 0, 1, 1], [], []>} : vector<8x32xf32>, vector<32x32xf32>, vector<8x32xf32> -> vector<8x32xf32>
    %28 = arith.addf %26, %27 : vector<8x32xf32>
    %29 = math.tanh %28 : vector<8x32xf32>
    %30 = vector.extract_strided_slice %13 {offsets = [3, 0, 0], sizes = [1, 8, 32], strides = [1, 1, 1]} : vector<8x8x32xf32> to vector<1x8x32xf32>
    %31 = vector.shape_cast %30 : vector<1x8x32xf32> to vector<8x32xf32>
    %cst_18 = arith.constant dense<0.000000e+00> : vector<8x32xf32>
    %32 = tpu.matmul %29, %4, %cst_18 {dimension_numbers = #tpu.dot_dimension_numbers<[1], [0], [0], [1], [0, 0, 1, 1], [], []>} : vector<8x32xf32>, vector<32x32xf32>, vector<8x32xf32> -> vector<8x32xf32>
    %33 = arith.addf %31, %32 : vector<8x32xf32>
    %34 = math.tanh %33 : vector<8x32xf32>
    %35 = vector.extract_strided_slice %13 {offsets = [4, 0, 0], sizes = [1, 8, 32], strides = [1, 1, 1]} : vector<8x8x32xf32> to vector<1x8x32xf32>
    %36 = vector.shape_cast %35 : vector<1x8x32xf32> to vector<8x32xf32>
    %cst_19 = arith.constant dense<0.000000e+00> : vector<8x32xf32>
    %37 = tpu.matmul %34, %4, %cst_19 {dimension_numbers = #tpu.dot_dimension_numbers<[1], [0], [0], [1], [0, 0, 1, 1], [], []>} : vector<8x32xf32>, vector<32x32xf32>, vector<8x32xf32> -> vector<8x32xf32>
    %38 = arith.addf %36, %37 : vector<8x32xf32>
    %39 = math.tanh %38 : vector<8x32xf32>
    %40 = vector.extract_strided_slice %13 {offsets = [5, 0, 0], sizes = [1, 8, 32], strides = [1, 1, 1]} : vector<8x8x32xf32> to vector<1x8x32xf32>
    %41 = vector.shape_cast %40 : vector<1x8x32xf32> to vector<8x32xf32>
    %cst_20 = arith.constant dense<0.000000e+00> : vector<8x32xf32>
    %42 = tpu.matmul %39, %4, %cst_20 {dimension_numbers = #tpu.dot_dimension_numbers<[1], [0], [0], [1], [0, 0, 1, 1], [], []>} : vector<8x32xf32>, vector<32x32xf32>, vector<8x32xf32> -> vector<8x32xf32>
    %43 = arith.addf %41, %42 : vector<8x32xf32>
    %44 = math.tanh %43 : vector<8x32xf32>
    %45 = vector.extract_strided_slice %13 {offsets = [6, 0, 0], sizes = [1, 8, 32], strides = [1, 1, 1]} : vector<8x8x32xf32> to vector<1x8x32xf32>
    %46 = vector.shape_cast %45 : vector<1x8x32xf32> to vector<8x32xf32>
    %cst_21 = arith.constant dense<0.000000e+00> : vector<8x32xf32>
    %47 = tpu.matmul %44, %4, %cst_21 {dimension_numbers = #tpu.dot_dimension_numbers<[1], [0], [0], [1], [0, 0, 1, 1], [], []>} : vector<8x32xf32>, vector<32x32xf32>, vector<8x32xf32> -> vector<8x32xf32>
    %48 = arith.addf %46, %47 : vector<8x32xf32>
    %49 = math.tanh %48 : vector<8x32xf32>
    %50 = vector.extract_strided_slice %13 {offsets = [7, 0, 0], sizes = [1, 8, 32], strides = [1, 1, 1]} : vector<8x8x32xf32> to vector<1x8x32xf32>
    %51 = vector.shape_cast %50 : vector<1x8x32xf32> to vector<8x32xf32>
    %cst_22 = arith.constant dense<0.000000e+00> : vector<8x32xf32>
    %52 = tpu.matmul %49, %4, %cst_22 {dimension_numbers = #tpu.dot_dimension_numbers<[1], [0], [0], [1], [0, 0, 1, 1], [], []>} : vector<8x32xf32>, vector<32x32xf32>, vector<8x32xf32> -> vector<8x32xf32>
    %53 = arith.addf %51, %52 : vector<8x32xf32>
    %54 = math.tanh %53 : vector<8x32xf32>
    %c0_23 = arith.constant 0 : index
    %c0_24 = arith.constant 0 : index
    %55 = vector.load %arg9[%c0_23, %c0_24] : memref<8x32xf32, #tpu.memory_space<vmem>>, vector<8x32xf32>
    tpu.vector_store %arg9[%c0_23, %c0_24], %54 {strides = array<i32>} : memref<8x32xf32, #tpu.memory_space<vmem>>, vector<8x32xf32>,
    %56 = vector.shape_cast %19 : vector<8x32xf32> to vector<1x8x32xf32>
    %57 = vector.shape_cast %24 : vector<8x32xf32> to vector<1x8x32xf32>
    %58 = vector.shape_cast %29 : vector<8x32xf32> to vector<1x8x32xf32>
    %59 = vector.shape_cast %34 : vector<8x32xf32> to vector<1x8x32xf32>
    %60 = vector.shape_cast %39 : vector<8x32xf32> to vector<1x8x32xf32>
    %61 = vector.shape_cast %44 : vector<8x32xf32> to vector<1x8x32xf32>
    %62 = vector.shape_cast %49 : vector<8x32xf32> to vector<1x8x32xf32>
    %63 = vector.shape_cast %54 : vector<8x32xf32> to vector<1x8x32xf32>
    %64 = tpu.concatenate %56, %57, %58, %59, %60, %61, %62, %63 in 0 : vector<1x8x32xf32>, vector<1x8x32xf32>, vector<1x8x32xf32>, vector<1x8x32xf32>, vector<1x8x32xf32>, vector<1x8x32xf32>, vector<1x8x32xf32>, vector<1x8x32xf32> -> vector<8x8x32xf32>
    %65 = vector.shape_cast %64 : vector<8x8x32xf32> to vector<64x32xf32>
    %cst_25 = arith.constant dense<0.000000e+00> : vector<64x32xf32>
    %66 = tpu.matmul %65, %5, %cst_25 {dimension_numbers = #tpu.dot_dimension_numbers<[1], [0], [0], [1], [0, 0, 1, 1], [], []>} : vector<64x32xf32>, vector<32x32xf32>, vector<64x32xf32> -> vector<64x32xf32>
    %67 = vector.broadcast %7 : vector<1x32xf32> to vector<64x32xf32>
    %68 = arith.addf %66, %67 : vector<64x32xf32>
    %69 = vector.shape_cast %68 : vector<64x32xf32> to vector<8x8x32xf32>
    %c0_26 = arith.constant 0 : index
    %c0_27 = arith.constant 0 : index
    %c0_28 = arith.constant 0 : index
    %70 = vector.load %arg8[%c0_26, %c0_27, %c0_28] : memref<8x8x32xf32, #tpu.memory_space<vmem>>, vector<8x8x32xf32>
    tpu.vector_store %arg8[%c0_26, %c0_27, %c0_28], %69 {strides = array<i32>} : memref<8x8x32xf32, #tpu.memory_space<vmem>>, vector<8x8x32xf32>,
    return
  }
  func.func @transform_0(%arg0: i32, %arg1: i32) -> (i32, i32, i32) {
    %c0_i32 = arith.constant 0 : i32
    %c0_i32_0 = arith.constant 0 : i32
    return %arg1, %arg0, %c0_i32 : i32, i32, i32
  }
  func.func @transform_1(%arg0: i32, %arg1: i32) -> (i32, i32) {
    %c0_i32 = arith.constant 0 : i32
    %c0_i32_0 = arith.constant 0 : i32
    %c0_i32_1 = arith.constant 0 : i32
    return %c0_i32, %c0_i32_0 : i32, i32
  }
  func.func @transform_2(%arg0: i32, %arg1: i32) -> (i32, i32) {
    %c0_i32 = arith.constant 0 : i32
    %c0_i32_0 = arith.constant 0 : i32
    %c0_i32_1 = arith.constant 0 : i32
    return %c0_i32, %c0_i32_0 : i32, i32
  }
  func.func @transform_3(%arg0: i32, %arg1: i32) -> (i32, i32) {
    %c0_i32 = arith.constant 0 : i32
    %c0_i32_0 = arith.constant 0 : i32
    %c0_i32_1 = arith.constant 0 : i32
    return %c0_i32, %c0_i32_0 : i32, i32
  }
  func.func @transform_4(%arg0: i32, %arg1: i32) -> (i32, i32) {
    %c0_i32 = arith.constant 0 : i32
    %c0_i32_0 = arith.constant 0 : i32
    %c0_i32_1 = arith.constant 0 : i32
    return %c0_i32, %c0_i32_0 : i32, i32
  }
  func.func @transform_5(%arg0: i32, %arg1: i32) -> (i32, i32) {
    %c0_i32 = arith.constant 0 : i32
    %c0_i32_0 = arith.constant 0 : i32
    %c0_i32_1 = arith.constant 0 : i32
    return %c0_i32, %c0_i32_0 : i32, i32
  }
  func.func @transform_6(%arg0: i32, %arg1: i32) -> (i32, i32, i32) {
    %c0_i32 = arith.constant 0 : i32
    %c0_i32_0 = arith.constant 0 : i32
    return %arg1, %arg0, %c0_i32 : i32, i32, i32
  }
}

</mosaic_0001>

<bundles_post_ra>
// kernel: tpu_custom_call.1
= control target key start
LH: loop header
LB: loop body
LE: loop exit
PB: predicated region body
PF: predicated region fallthrough
CT: control target
= control target key end

     0   :  { %11 = vsyncpa [#allocation4], 0  ;;  %s1567_s0 = inlined_call_operand.hbm [shape: f32[8,8,16], index: 0, kind: input, shape index: {}]   ;;  %s1568_s1 = inlined_call_operand.hbm [shape: f32[16,32], index: 1, kind: input, shape index: {}]   ;;  %s1569_s2 = inlined_call_operand.hbm [shape: f32[32,32], index: 2, kind: input, shape index: {}]   ;;  %s1570_s3 = inlined_call_operand.vmem [shape: f32[1,32], index: 3, kind: input, shape index: {}]   ;;  %s1571_s4 = inlined_call_operand.hbm [shape: f32[32,32], index: 4, kind: input, shape index: {}]   ;;  %s1572_s5 = inlined_call_operand.vmem [shape: f32[1,32], index: 5, kind: input, shape index: {}]   ;;  %s1573_s6 = inlined_call_operand.hbm [shape: f32[8,8,32], index: 6, kind: output, shape index: {}]  }
   0x1   :  { %12 = vsyncpa [#allocation7], 0 }
   0x2   :  { %13 = vsyncpa [#allocation10], 0 }
   0x3   :  { %14 = vsyncpa [#allocation5], 0  ;;  %s1334_s21 = smov [#allocation6]   ;;  %s1335_s23 = smov [#allocation3]  }
   0x4   :  { %s32_s22 = sshll.u32 %s1334_s21, 4  ;;  %s20_s24 = sshll.u32 %s1335_s23, 4  ;;  %s33_s22 = int_to_ptr.vmem [resolvable:$true] %s32_s22  ;;  %s21_s24 = int_to_ptr.vmem [resolvable:$true] %s20_s24 }
   0x5   :  { %s1234_s25 = scalar_lea.vmem %s33_s22, 256  ;;  %p1239_p1 = scmp.lt.s32.totalorder %s33_s22, %s33_s22 }
   0x6   :  { %p1235_p0 = scmp.ne.s32.totalorder %s33_s22, %s1234_s25  ;;  %p1240_p2 = scmp.lt.s32.totalorder %s1234_s25, %s1234_s25 }
   0x8   :  { %p1241_p3 = por %p1240_p2, %p1239_p1 }
   0xa   :  { %p1242_p4 = pnand %p1241_p3, %p1235_p0 }
   0xc   :  { %1245 = shalt.err (!%p1242_p4)
}
   0xd   :  { %s1336_s26 = smov 128   ;;  %s1337_s27 = smov 8  }
   0xe   :  { %38 = dma.hbm_to_vmem [thread:$0]  %s1568_s1, 256, %s33_s22, [#allocation7], %s1336_s26, %s1336_s26, %s1337_s27  }
   0xf   :  { %s1254_s30 = scalar_lea.vmem %s21_s24, 1024  ;;  %p1259_p6 = scmp.lt.s32.totalorder %s21_s24, %s21_s24 }
  0x10   :  { %p1255_p5 = scmp.ne.s32.totalorder %s21_s24, %s1254_s30  ;;  %p1260_p7 = scmp.lt.s32.totalorder %s1254_s30, %s1254_s30 }
  0x12   :  { %p1261_p8 = por %p1260_p7, %p1259_p6 }
  0x14   :  { %p1262_p9 = pnand %p1261_p8, %p1255_p5 }
  0x16   :  { %1265 = shalt.err (!%p1262_p9)
}
  0x17   :  { %26 = dma.hbm_to_vmem [thread:$0]  %s1567_s0, 1024, %s21_s24, [#allocation4], %s1336_s26, %s1336_s26, %s1337_s27  }
  0x18   :  { %s1338_s9 = smov [#allocation8]   ;;  %s1339_s11 = smov [#allocation9]  }
  0x19   :  { %s44_s10 = sshll.u32 %s1338_s9, 4  ;;  %s58_s12 = sshll.u32 %s1339_s11, 4  ;;  %s45_s10 = int_to_ptr.vmem [resolvable:$true] %s44_s10  ;;  %s59_s12 = int_to_ptr.vmem [resolvable:$true] %s58_s12 }
  0x1a   :  { %s1274_s1 = scalar_lea.vmem %s45_s10, 512  ;;  %p1279_p11 = scmp.lt.s32.totalorder %s45_s10, %s45_s10 }
  0x1b   :  { %p1275_p10 = scmp.ne.s32.totalorder %s45_s10, %s1274_s1  ;;  %p1280_p12 = scmp.lt.s32.totalorder %s1274_s1, %s1274_s1 }
  0x1d   :  { %p1281_p13 = por %p1280_p12, %p1279_p11 }
  0x1f   :  { %p1282_p0 = pnand %p1281_p13, %p1275_p10 }
  0x21   :  { %1285 = shalt.err (!%p1282_p0)
}
  0x22   :  { %50 = dma.hbm_to_vmem [thread:$0]  %s1569_s2, 512, %s45_s10, [#allocation7], %s1336_s26, %s1336_s26, %s1337_s27  }
  0x23   :  { %s1294_s0 = scalar_lea.vmem %s59_s12, 512  ;;  %p1299_p2 = scmp.lt.s32.totalorder %s59_s12, %s59_s12 }
  0x24   :  { %p1295_p1 = scmp.ne.s32.totalorder %s59_s12, %s1294_s0  ;;  %p1300_p3 = scmp.lt.s32.totalorder %s1294_s0, %s1294_s0 }
  0x26   :  { %p1301_p4 = por %p1300_p3, %p1299_p2 }
  0x28   :  { %p1302_p5 = pnand %p1301_p4, %p1295_p1 }
  0x2a   :  { %1305 = shalt.err (!%p1302_p5)
}
  0x2b   :  { %64 = dma.hbm_to_vmem [thread:$0]  %s1571_s4, 512, %s59_s12, [#allocation10], %s1336_s26, %s1336_s26, %s1337_s27  }
  0x2c   :  { %1326 = dma.done.wait [#allocation4], 1024  }
  0x2d   :  { %1327 = vsyncadd [#allocation4], 4294966272 }
  0x2e   :  { %1328 = dma.done.wait [#allocation7], 768  }
  0x2f   :  { %1329 = vsyncadd [#allocation7], 4294966528 }
  0x30   :  { %1330 = dma.done.wait [#allocation10], 512  }
  0x31   :  { %1331 = vsyncadd [#allocation10], 4294966784  ;;  %vm83_vm0 = vcmask 261120   ;;  %v1340_v0 = vmov 0.0   ;;  %vm111_vm1 = vcmask 130048   ;;  %v86_v1 = vld [vmem:[#allocation6 + $0x8] sm:$0xff] }
  0x32   :  { %84 = vst.msk [vmem:[#allocation2] sm:$0xff] %vm83_vm0, %v1340_v0  ;;  %v85_v2 = vld [vmem:[#allocation6] sm:$0xff]  ;;  %1197 = vmatprep.subr.mxu1 %v86_v1  ;;  %1073 = vmatprep.subr.mxu0 %v86_v1  ;;  %v102_v4 = vld [vmem:[#allocation3 + $0x28] sm:$0xff]  ;;  %v103_v8 = vld [vmem:[#allocation3 + $0x30] sm:$0xff]  ;;  %vm1341_vm2 = vmmov 0  }
  0x33   :  { %v101_v3 = vld [vmem:[#allocation3 + $0x20] sm:$0xff]  ;;  %1199 = vmatpush3.msra.mxu1 %v86_v1  ;;  %1074 = vmatpush3.msra.mxu0 %v86_v1  ;;  %v1405_v5 = vld [vmem:[#allocation8 + $0x18] sm:$0xff]  ;;  %v104_v10 = vld [vmem:[#allocation3 + $0x38] sm:$0xff] }
  0x34   :  { %1083 = vmatprep.mubr.msk.f32.mxu1 %vm111_vm1, %v101_v3  ;;  %1198 = vmatprep.subr.mxu1 %v85_v2  ;;  %v97_v6 = vld [vmem:[#allocation3] sm:$0xff]  ;;  %v98_v7 = vld [vmem:[#allocation3 + $0x8] sm:$0xff]  ;;  %v1416_v11 = vld [vmem:[#allocation8 + $0x8] sm:$0xff] }
  0x35   :  { %1200 = vmatpush3.msra.mxu1 %v85_v2  ;;  %1075 = vmatprep.subr.mxu0 %v85_v2  ;;  %v1410_v9 = vld [vmem:[#allocation8 + $0x10] sm:$0xff]  ;;  %v1422_v12 = vld [vmem:[#allocation8] sm:$0xff]  ;;  %v1458_v19 = vld [vmem:[%s1570_s3] ss:$0 sm:$0xff] }
  0x36   :  { %1084 = vmatmul.mubr.msk.f32.vlgmr.msra.gmra.mxu1 %vm111_vm1, %v102_v4  ;;  %1089 = vmatprep.subr.mxu1 %v1340_v0  ;;  %v99_v26 = vld [vmem:[#allocation3 + $0x10] sm:$0xff]  ;;  %v100_v27 = vld [vmem:[#allocation3 + $0x18] sm:$0xff]  ;;  %v94_v50 = vld [vmem:[#allocation9 + $0x18] sm:$0xff] }
  0x37   :  { %1090 = vmatpush3.msra.mxu1 %v1405_v5  ;;  %1076 = vmatpush3.msra.mxu0 %v85_v2  ;;  %v93_v56 = vld [vmem:[#allocation9 + $0x10] sm:$0xff]  ;;  %v92_v57 = vld [vmem:[#allocation9 + $0x8] sm:$0xff]  ;;  %v91_v58 = vld [vmem:[#allocation9] sm:$0xff] }
  0x38   :  { %1077 = vmatprep.mubr.msk.f32.mxu0 %vm111_vm1, %v97_v6  ;;  %1091 = vmatprep.subr.mxu1 %v1340_v0  ;;  %v1002_v63 = vld [vmem:[%s1572_s5] ss:$0 sm:$0xff]  ;;  %s1342_s5 = smov [#allocation11]  }
  0x39   :  { %1078 = vmatmul.mubr.msk.f32.vlgmr.msra.gmra.mxu0 %vm111_vm1, %v98_v7  ;;  %1086 = vmatprep.mubr.msk.f32.mxu1 %vm111_vm1, %v103_v8  ;;  %v241_v13 = vld [vmem:[#allocation2] sm:$0xff]  ;;  %s971_s18 = sshll.u32 %s1342_s5, 4  ;;  %s972_s18 = int_to_ptr.vmem [resolvable:$true] %s971_s18 }
  0x3a   :  { %1092 = vmatpush3.msra.mxu1 %v1410_v9  ;;  %1111 = vmatprep.subr.mxu0 %v1340_v0  ;;  %s1306_s19 = scalar_lea.vmem %s972_s18, 1024  ;;  %p1311_p7 = scmp.lt.s32.totalorder %s972_s18, %s972_s18 }
  0x3b   :  { %1087 = vmatmul.mubr.msk.f32.gmra.mxu1 %vm111_vm1, %v104_v10  ;;  %1093 = vmatprep.subr.mxu1 %v1340_v0  ;;  %p1307_p6 = scmp.ne.s32.totalorder %s972_s18, %s1306_s19  ;;  %p1312_p8 = scmp.lt.s32.totalorder %s1306_s19, %s1306_s19 }
  0x3c   :  { %1094 = vmatpush3.msra.mxu1 %v1416_v11  ;;  %1097 = vmatprep.mubr.msk.f32.mxu1 %vm1341_vm2, %v1340_v0 }
  0x3d   :  { %1095 = vmatprep.subr.mxu1 %v1340_v0  ;;  %1112 = vmatpush3.msra.mxu0 %v1405_v5  ;;  %p1313_p9 = por %p1312_p8, %p1311_p7 }
  0x3e   :  { %1096 = vmatpush3.msra.mxu1 %v1422_v12  ;;  %1113 = vmatprep.subr.mxu0 %v1340_v0 }
  0x3f   :  { %1098 = vmatmul.mubr.msk.f32.vlgmr.msra.gmra.mxu1 %vm83_vm0, %v241_v13  ;;  %1100 = vmatprep.subr.mxu1 %v1340_v0  ;;  %p1314_p10 = pnand %p1313_p9, %p1307_p6 }
  0x40   :  { %1101 = vmatpush3.msra.mxu1 %v1405_v5  ;;  %1108 = vmatprep.mubr.msk.f32.mxu1 %vm1341_vm2, %v1340_v0 }
  0x41   :  { %1102 = vmatprep.subr.mxu1 %v1340_v0  ;;  %1114 = vmatpush3.msra.mxu0 %v1410_v9 }
  0x42   :  { %1103 = vmatpush3.msra.mxu1 %v1410_v9  ;;  %1115 = vmatprep.subr.mxu0 %v1340_v0 }
  0x43   :  { %1104 = vmatprep.subr.mxu1 %v1340_v0  ;;  %1116 = vmatpush3.msra.mxu0 %v1416_v11 }
  0x44   :  { %1105 = vmatpush3.msra.mxu1 %v1416_v11  ;;  %1117 = vmatprep.subr.mxu0 %v1340_v0 }
  0x45   :  { %1106 = vmatprep.subr.mxu1 %v1340_v0  ;;  %1118 = vmatpush3.msra.mxu0 %v1422_v12 }
  0x46   :  { %1107 = vmatpush3.msra.mxu1 %v1422_v12  ;;  %1133 = vmatprep.subr.mxu0 %v1340_v0 }
  0x47   :  { %1122 = vmatprep.subr.mxu1 %v1340_v0  ;;  %1080 = vmatprep.mubr.msk.f32.mxu0 %vm111_vm1, %v99_v26 }
  0x48   :  { %1081 = vmatmul.mubr.msk.f32.gmra.mxu0 %vm111_vm1, %v100_v27 }
  0x49   :  { %1119 = vmatprep.mubr.msk.f32.mxu0 %vm1341_vm2, %v1340_v0 }
  0xf6   :  { %v1449_v14 = vpop.f32.mrf.mxu1 }
  0xf7   :  { %v228_v51 = vadd.f32 %v1449_v14, %v1458_v19 }
  0xf8   :  { %v1451_v15 = vpop.f32.mrf.mxu1 }
  0xf9   :  { %v1079_v16 = vpop.f32.mrf.mxu0  ;;  %v223_v45 = vadd.f32 %v1458_v19, %v1451_v15 }
  0xfa   :  { %v208_v28 = vadd.f32 %v1079_v16, %v1458_v19 }
  0xfb   :  { %v1453_v17 = vpop.f32.mrf.mxu1  ;;  %v202_v18 = vpop.f32.mrf.mxu0 }
  0xfc   :  { %v203_v21 = vadd.f32 %v1458_v19, %v202_v18  ;;  %v238_v13 = vadd.f32 %v1453_v17, %v1458_v19 }
  0xfd   :  { %v1460_v20 = vpop.f32.mrf.mxu1 }
  0xfe   :  { %v233_v59 = vadd.f32 %v1458_v19, %v1460_v20 }
  0xff   :  { %v312_v22 = vpop.f32.mrf.mxu1 }
 0x100   :  { %v316_v23 = vadd.f32 %v312_v22, %v203_v21 }
 0x101   :  { %v1099_v24 = vpop.f32.mrf.mxu1 }
 0x102   :  { %1210 = vtanh.f32 %v316_v23 }
 0x108   :  { %v1082_v33 = vpop.f32.mrf.mxu0 }
 0x109   :  { %v218_v40 = vadd.f32 %v1082_v33, %v1458_v19 }
 0x10a   :  { %v212_v34 = vpop.f32.mrf.mxu0 }
 0x10b   :  { %v213_v35 = vadd.f32 %v1458_v19, %v212_v34 }
 0x10f   :  { %v1463_v25 = vpop.eup %1210 }
 0x110   :  { %1109 = vmatmul.mubr.msk.f32.vlgmr.msra.gmra.mxu1 %vm83_vm0, %v1463_v25 }
 0x111   :  { %1123 = vmatpush3.msra.mxu1 %v1405_v5  ;;  %1130 = vmatprep.mubr.msk.f32.mxu1 %vm1341_vm2, %v1340_v0 }
 0x112   :  { %1124 = vmatprep.subr.mxu1 %v1340_v0 }
 0x113   :  { %1125 = vmatpush3.msra.mxu1 %v1410_v9 }
 0x114   :  { %1126 = vmatprep.subr.mxu1 %v1340_v0 }
 0x115   :  { %1127 = vmatpush3.msra.mxu1 %v1416_v11 }
 0x116   :  { %1128 = vmatprep.subr.mxu1 %v1340_v0 }
 0x117   :  { %1129 = vmatpush3.msra.mxu1 %v1422_v12 }
 0x118   :  { %1144 = vmatprep.subr.mxu1 %v1340_v0 }
 0x1d0   :  { %v387_v29 = vpop.f32.mrf.mxu1 }
 0x1d1   :  { %v391_v30 = vadd.f32 %v387_v29, %v208_v28 }
 0x1d2   :  { %v1110_v31 = vpop.f32.mrf.mxu1 }
 0x1d3   :  { %1212 = vtanh.f32 %v391_v30 }
 0x1e0   :  { %v1482_v32 = vpop.eup %1212 }
 0x1e1   :  { %1120 = vmatmul.mubr.msk.f32.vlgmr.msra.gmra.mxu0 %vm83_vm0, %v1482_v32 }
 0x1e2   :  { %1134 = vmatpush3.msra.mxu0 %v1405_v5  ;;  %1141 = vmatprep.mubr.msk.f32.mxu0 %vm1341_vm2, %v1340_v0 }
 0x1e3   :  { %1135 = vmatprep.subr.mxu0 %v1340_v0 }
 0x1e4   :  { %1136 = vmatpush3.msra.mxu0 %v1410_v9 }
 0x1e5   :  { %1137 = vmatprep.subr.mxu0 %v1340_v0 }
 0x1e6   :  { %1138 = vmatpush3.msra.mxu0 %v1416_v11 }
 0x1e7   :  { %1139 = vmatprep.subr.mxu0 %v1340_v0 }
 0x1e8   :  { %1140 = vmatpush3.msra.mxu0 %v1422_v12 }
 0x1e9   :  { %1155 = vmatprep.subr.mxu0 %v1340_v0 }
 0x2a1   :  { %v462_v36 = vpop.f32.mrf.mxu0 }
 0x2a2   :  { %v466_v37 = vadd.f32 %v462_v36, %v213_v35 }
 0x2a3   :  { %v1121_v38 = vpop.f32.mrf.mxu0 }
 0x2a4   :  { %1214 = vtanh.f32 %v466_v37 }
 0x2b1   :  { %v1215_v39 = vpop.eup %1214 }
 0x2b2   :  { %1131 = vmatmul.mubr.msk.f32.vlgmr.msra.gmra.mxu1 %vm83_vm0, %v1215_v39 }
 0x2b3   :  { %1145 = vmatpush3.msra.mxu1 %v1405_v5  ;;  %1152 = vmatprep.mubr.msk.f32.mxu1 %vm1341_vm2, %v1340_v0 }
 0x2b4   :  { %1146 = vmatprep.subr.mxu1 %v1340_v0 }
 0x2b5   :  { %1147 = vmatpush3.msra.mxu1 %v1410_v9 }
 0x2b6   :  { %1148 = vmatprep.subr.mxu1 %v1340_v0 }
 0x2b7   :  { %1149 = vmatpush3.msra.mxu1 %v1416_v11 }
 0x2b8   :  { %1150 = vmatprep.subr.mxu1 %v1340_v0 }
 0x2b9   :  { %1151 = vmatpush3.msra.mxu1 %v1422_v12 }
 0x2ba   :  { %1166 = vmatprep.subr.mxu1 %v1340_v0 }
 0x372   :  { %v537_v41 = vpop.f32.mrf.mxu1 }
 0x373   :  { %v541_v42 = vadd.f32 %v537_v41, %v218_v40 }
 0x374   :  { %v1132_v43 = vpop.f32.mrf.mxu1 }
 0x375   :  { %1216 = vtanh.f32 %v541_v42 }
 0x382   :  { %v1217_v44 = vpop.eup %1216 }
 0x383   :  { %1142 = vmatmul.mubr.msk.f32.vlgmr.msra.gmra.mxu0 %vm83_vm0, %v1217_v44 }
 0x384   :  { %1156 = vmatpush3.msra.mxu0 %v1405_v5  ;;  %1163 = vmatprep.mubr.msk.f32.mxu0 %vm1341_vm2, %v1340_v0 }
 0x385   :  { %1157 = vmatprep.subr.mxu0 %v1340_v0 }
 0x386   :  { %1158 = vmatpush3.msra.mxu0 %v1410_v9 }
 0x387   :  { %1159 = vmatprep.subr.mxu0 %v1340_v0 }
 0x388   :  { %1160 = vmatpush3.msra.mxu0 %v1416_v11 }
 0x389   :  { %1161 = vmatprep.subr.mxu0 %v1340_v0 }
 0x38a   :  { %1162 = vmatpush3.msra.mxu0 %v1422_v12 }
 0x38b   :  { %1177 = vmatprep.subr.mxu0 %v94_v50 }
 0x443   :  { %v612_v46 = vpop.f32.mrf.mxu0 }
 0x444   :  { %v616_v47 = vadd.f32 %v612_v46, %v223_v45 }
 0x445   :  { %v1143_v48 = vpop.f32.mrf.mxu0 }
 0x446   :  { %1218 = vtanh.f32 %v616_v47 }
 0x453   :  { %v1219_v49 = vpop.eup %1218 }
 0x454   :  { %1153 = vmatmul.mubr.msk.f32.vlgmr.msra.gmra.mxu1 %vm83_vm0, %v1219_v49 }
 0x455   :  { %1167 = vmatpush3.msra.mxu1 %v1405_v5  ;;  %1174 = vmatprep.mubr.msk.f32.mxu1 %vm1341_vm2, %v1340_v0 }
 0x456   :  { %1168 = vmatprep.subr.mxu1 %v1340_v0 }
 0x457   :  { %1169 = vmatpush3.msra.mxu1 %v1410_v9 }
 0x458   :  { %1170 = vmatprep.subr.mxu1 %v1340_v0 }
 0x459   :  { %1171 = vmatpush3.msra.mxu1 %v1416_v11 }
 0x45a   :  { %1172 = vmatprep.subr.mxu1 %v1340_v0 }
 0x45b   :  { %1173 = vmatpush3.msra.mxu1 %v1422_v12 }
 0x514   :  { %v687_v52 = vpop.f32.mrf.mxu1 }
 0x515   :  { %v691_v53 = vadd.f32 %v687_v52, %v228_v51 }
 0x516   :  { %v1154_v54 = vpop.f32.mrf.mxu1 }
 0x517   :  { %1220 = vtanh.f32 %v691_v53 }
 0x524   :  { %v1221_v55 = vpop.eup %1220 }
 0x525   :  { %1164 = vmatmul.mubr.msk.f32.vlgmr.msra.gmra.mxu0 %vm83_vm0, %v1221_v55 }
 0x526   :  { %1178 = vmatpush3.msra.mxu0 %v94_v50  ;;  %1185 = vmatprep.mubr.msk.f32.mxu0 %vm83_vm0, %v1463_v25 }
 0x527   :  { %1179 = vmatprep.subr.mxu0 %v93_v56 }
 0x528   :  { %1180 = vmatpush3.msra.mxu0 %v93_v56 }
 0x529   :  { %1181 = vmatprep.subr.mxu0 %v92_v57 }
 0x52a   :  { %1182 = vmatpush3.msra.mxu0 %v92_v57 }
 0x52b   :  { %1183 = vmatprep.subr.mxu0 %v91_v58 }
 0x52c   :  { %1184 = vmatpush3.msra.mxu0 %v91_v58 }
 0x52d   :  { %1186 = vmatmul.mubr.msk.f32.vlgmr.msra.gmra.mxu0 %vm83_vm0, %v1482_v32 }
 0x52e   :  { %1188 = vmatprep.mubr.msk.f32.mxu0 %vm83_vm0, %v1215_v39 }
 0x531   :  { %1189 = vmatmul.mubr.msk.f32.gmra.mxu0 %vm83_vm0, %v1217_v44 }
 0x532   :  { %1191 = vmatprep.mubr.msk.f32.mxu0 %vm83_vm0, %v1219_v49 }
 0x535   :  { %1192 = vmatmul.mubr.msk.f32.gmra.mxu0 %vm83_vm0, %v1221_v55 }
 0x5e5   :  { %v762_v60 = vpop.f32.mrf.mxu0 }
 0x5e6   :  { %v766_v61 = vadd.f32 %v762_v60, %v233_v59 }
 0x5e7   :  { %v1165_v62 = vpop.f32.mrf.mxu0 }
 0x5e8   :  { %1222 = vtanh.f32 %v766_v61 }
 0x5ed   :  { %v1187_v0 = vpop.f32.mrf.mxu0 }
 0x5ee   :  { %v925_v1 = vadd.f32 %v1187_v0, %v1002_v63 }
 0x5ef   :  { %v919_v2 = vpop.f32.mrf.mxu0 }
 0x5f0   :  { %959 = vst.msk [vmem:[#allocation11 + $0x8] sm:$0xff] %vm83_vm0, %v925_v1  ;;  %v920_v3 = vadd.f32 %v1002_v63, %v919_v2 }
 0x5f1   :  { %v1190_v4 = vpop.f32.mrf.mxu0 }
 0x5f2   :  { %958 = vst.msk [vmem:[#allocation11] sm:$0xff] %vm83_vm0, %v920_v3  ;;  %v935_v5 = vadd.f32 %v1190_v4, %v1002_v63 }
 0x5f3   :  { %v929_v6 = vpop.f32.mrf.mxu0 }
 0x5f4   :  { %961 = vst.msk [vmem:[#allocation11 + $0x18] sm:$0xff] %vm83_vm0, %v935_v5  ;;  %v930_v7 = vadd.f32 %v1002_v63, %v929_v6 }
 0x5f5   :  { %v1223_v8 = vpop.eup %1222  ;;  %v1193_v9 = vpop.f32.mrf.mxu0 }
 0x5f6   :  { %960 = vst.msk [vmem:[#allocation11 + $0x10] sm:$0xff] %vm83_vm0, %v930_v7  ;;  %v945_v10 = vadd.f32 %v1193_v9, %v1002_v63  ;;  %1175 = vmatmul.mubr.msk.f32.vlgmr.msra.gmra.mxu1 %vm83_vm0, %v1223_v8  ;;  %1194 = vmatprep.mubr.msk.f32.mxu0 %vm83_vm0, %v1223_v8 }
 0x5f7   :  { %v939_v11 = vpop.f32.mrf.mxu0 }
 0x5f8   :  { %963 = vst.msk [vmem:[#allocation11 + $0x28] sm:$0xff] %vm83_vm0, %v945_v10  ;;  %v940_v12 = vadd.f32 %v1002_v63, %v939_v11 }
 0x5fa   :  { %962 = vst.msk [vmem:[#allocation11 + $0x20] sm:$0xff] %vm83_vm0, %v940_v12 }
 0x6b6   :  { %v837_v14 = vpop.f32.mrf.mxu1 }
 0x6b7   :  { %v841_v15 = vadd.f32 %v837_v14, %v238_v13 }
 0x6b8   :  { %v1176_v16 = vpop.f32.mrf.mxu1 }
 0x6b9   :  { %1224 = vtanh.f32 %v841_v15 }
 0x6c6   :  { %v1225_v18 = vpop.eup %1224 }
 0x6c7   :  { %843 = vst.msk [vmem:[#allocation2] sm:$0xff] %vm83_vm0, %v1225_v18  ;;  %1195 = vmatmul.mubr.msk.f32.gmra.mxu0 %vm83_vm0, %v1225_v18 }
 0x787   :  { %v1196_v20 = vpop.f32.mrf.mxu0 }
 0x788   :  { %v955_v21 = vadd.f32 %v1196_v20, %v1002_v63 }
 0x789   :  { %v949_v22 = vpop.f32.mrf.mxu0 }
 0x78a   :  { %965 = vst.msk [vmem:[#allocation11 + $0x38] sm:$0xff] %vm83_vm0, %v955_v21  ;;  %v950_v23 = vadd.f32 %v1002_v63, %v949_v22 }
 0x78c   :  { %964 = vst.msk [vmem:[#allocation11 + $0x30] sm:$0xff] %vm83_vm0, %v950_v23 }
 0x78d   :  { %1317 = shalt.err (!%p1314_p10)
}
 0x78e   :  { %977 = dma.vmem_to_hbm [thread:$0]  %s972_s18, 1024, %s1573_s6, [#allocation5], %s1336_s26, %s1336_s26, %s1337_s27  }
 0x78f   :  { %1332 = dma.done.wait [#allocation5], 1024  }
 0x790   :  { %1333 = vsyncadd [#allocation5], 4294966272 }
 0x791   :  { %981 = vsyncpa [#allocation4], 1 }
 0x792   :  { %982 = vsyncpa [#allocation7], 1 }
 0x793   :  { %983 = vsyncpa [#allocation10], 1 }
 0x794   :  { %984 = vsyncpa [#allocation5], 1 }

</bundles_post_ra>
